<compile_context>
chip_gen: v5e
topology: v5e:2x2
jax: 0.10.0
libtpu: 0.0.40
codegen_flags: <defaults>
</compile_context>

<pallas_src>
import jax
import jax.numpy as jnp
from jax import lax
from jax.experimental import pallas as pl
from jax.experimental.pallas import tpu as pltpu


def _upsample_phase_kernel(x_ref, xh_ref, wee_ref, weo_ref, woe_ref, woo_ref,
                           b_ref, o_ref):
    # x_ref : (1, TH, W+1, Cin)      bf16, input rows i = t*TH .. t*TH+TH-1
    #                                 (right column is the zero halo pad)
    # xh_ref: (1, 1,  W+1, Cin)      bf16, halo row i = (t+1)*TH
    # w*_ref: (taps*Cin, Cout)       bf16, per-phase packed weights
    # b_ref : (1, Cout)              f32 bias
    # o_ref : (1, TH, 2, W, 2*Cout)  f32, phase-separated output tile
    TH, Wp = x_ref.shape[1], x_ref.shape[2]
    W = Wp - 1
    Cout = b_ref.shape[1]
    M = TH * W

    xa = x_ref[0]                                   # rows i      : (TH, Wp, Cin)
    if TH > 1:                                      # rows i + 1 (shift + halo row)
        xb = jnp.concatenate([xa[1:], xh_ref[0]], axis=0)
    else:
        xb = xh_ref[0]

    # The four shifted views feeding the phase matmuls.
    x00 = xa[:, :W, :]      # x[i,   j]
    x01 = xa[:, 1:, :]      # x[i,   j+1]
    x10 = xb[:, :W, :]      # x[i+1, j]
    x11 = xb[:, 1:, :]      # x[i+1, j+1]

    bias = b_ref[...].astype(jnp.float32)           # (1, Cout)

    def phase(patches, w_ref_):
        # im2col: fold the taps into the contraction -> one 2-D MXU matmul.
        p = patches[0] if len(patches) == 1 else jnp.concatenate(patches, axis=-1)
        p2 = p.reshape(M, p.shape[-1])                        # (M, taps*Cin) bf16
        r = jnp.dot(p2, w_ref_[...],
                    preferred_element_type=jnp.float32)       # (M, Cout) f32
        r = r + bias                                          # f32 epilogue
        return r.reshape(TH, W, Cout)

    p_ee = phase([x00], wee_ref)                    # out[2i,   2j]
    p_eo = phase([x00, x01], weo_ref)               # out[2i,   2j+1]
    p_oe = phase([x00, x10], woe_ref)               # out[2i+1, 2j]
    p_oo = phase([x00, x01, x10, x11], woo_ref)     # out[2i+1, 2j+1]

    # Lane-dense stores: column parity lives in the (2*Cout) lane axis, row
    # parity in the explicit size-2 axis; wrapper reshape undoes it for free.
    o_ref[0, :, 0, :, :] = jnp.concatenate([p_ee, p_eo], axis=-1).astype(o_ref.dtype)
    o_ref[0, :, 1, :, :] = jnp.concatenate([p_oe, p_oo], axis=-1).astype(o_ref.dtype)


def _pick_row_tile(H):
    # Largest divisor of H that is <= 8 input rows (16 output rows / tile).
    # Keeps (f32 output tile x 2 buffers + inputs + weights) far under the v7x
    # 64 MiB VMEM budget for realistic channel counts while still giving many
    # grid steps for DMA pipelining / cross-TC sharding.
    for d in range(8, 0, -1):
        if H % d == 0:
            return d
    return 1


@jax.jit
def upsample_forward(x_nchw, weight, bias):
    """ConvTranspose2d(Cin, Cout=Cin//2, 3, stride=2, padding=1, output_padding=1).

    x_nchw: (N, Cin, H, W) float32
    weight: (Cin, Cout, 3, 3) float32 (PyTorch ConvTranspose2d layout)
    bias:   (Cout,) float32
    returns (N, Cout, 2H, 2W) float32
    """
    N, Cin, H, W = x_nchw.shape
    Cout = weight.shape[1]
    Ho, Wo = 2 * H, 2 * W
    TH = _pick_row_tile(H)
    Wp = W + 1

    # NCHW -> NHWC (channels on the lane/contraction axis), +1 bottom/right
    # halo pad for the x[i+1]/x[j+1] taps, bf16 for the MXU inputs.
    x = jnp.transpose(x_nchw, (0, 2, 3, 1))
    x_pad = jnp.pad(x, ((0, 0), (0, 1), (0, 1), (0, 0))).astype(jnp.bfloat16)

    # ConvTranspose2d scatter relation: out[2i-1+kh, 2j-1+kw] += x[i,j] . W[kh,kw]
    #   => per output parity (a, b):
    #   (even, even): W[1,1]                              on  x[i, j]
    #   (even, odd) : W[1,2], W[1,0]                      on  x[i, j], x[i, j+1]
    #   (odd,  even): W[2,1], W[0,1]                      on  x[i, j], x[i+1, j]
    #   (odd,  odd) : W[2,2], W[2,0], W[0,2], W[0,0]      on  x[i,j], x[i,j+1],
    #                                                         x[i+1,j], x[i+1,j+1]
    Wt = jnp.transpose(weight, (2, 3, 0, 1)).astype(jnp.bfloat16)   # (kh, kw, Cin, Cout)
    w_ee = Wt[1, 1]                                                 # (Cin, Cout)
    w_eo = jnp.concatenate([Wt[1, 2], Wt[1, 0]], axis=0)            # (2*Cin, Cout)
    w_oe = jnp.concatenate([Wt[2, 1], Wt[0, 1]], axis=0)            # (2*Cin, Cout)
    w_oo = jnp.concatenate([Wt[2, 2], Wt[2, 0], Wt[0, 2], Wt[0, 0]], axis=0)  # (4*Cin, Cout)
    b2d = bias.astype(jnp.float32).reshape(1, Cout)

    out5 = pl.pallas_call(
        _upsample_phase_kernel,
        out_shape=jax.ShapeDtypeStruct((N, H, 2, W, 2 * Cout), jnp.float32),
        grid_spec=pltpu.PrefetchScalarGridSpec(
            num_scalar_prefetch=0,
            grid=(N, H // TH),
            in_specs=[
                # Main row tile (rows t*TH .. t*TH+TH-1 of the padded input).
                pl.BlockSpec((1, TH, Wp, Cin), lambda n, t: (n, t, 0, 0)),
                # 1-row halo (row (t+1)*TH; in bounds because of the +1 pad).
                pl.BlockSpec((1, 1, Wp, Cin), lambda n, t: (n, (t + 1) * TH, 0, 0)),
                # Per-phase weights + bias: constant blocks, stay VMEM-resident.
                pl.BlockSpec((Cin, Cout), lambda n, t: (0, 0)),
                pl.BlockSpec((2 * Cin, Cout), lambda n, t: (0, 0)),
                pl.BlockSpec((2 * Cin, Cout), lambda n, t: (0, 0)),
                pl.BlockSpec((4 * Cin, Cout), lambda n, t: (0, 0)),
                pl.BlockSpec((1, Cout), lambda n, t: (0, 0)),
            ],
            out_specs=pl.BlockSpec((1, TH, 2, W, 2 * Cout),
                                   lambda n, t: (n, t, 0, 0, 0)),
        ),
        compiler_params=pltpu.CompilerParams(
            dimension_semantics=("parallel", "parallel"),
            vmem_limit_bytes=48 * 1024 * 1024),
    )(x_pad, x_pad, w_ee, w_eo, w_oe, w_oo, b2d)

    # (N, H, 2, W, 2*Cout) is row-major-identical to (N, 2H, 2W, Cout): free view.
    out_nhwc = out5.reshape(N, Ho, Wo, Cout)
    # NHWC -> NCHW to match the PyTorch module's output layout.
    return jnp.transpose(out_nhwc, (0, 3, 1, 2))


def _reference_forward(x_nchw, weight, bias):
    """Plain-JAX reference (lax.conv_general_dilated) for verification."""
    Cout = weight.shape[1]
    # equivalent regular conv: flip spatial, swap in/out channels -> OIHW
    w_conv = jnp.transpose(weight[:, :, ::-1, ::-1], (1, 0, 2, 3))
    out = lax.conv_general_dilated(
        x_nchw, w_conv,
        window_strides=(1, 1),
        padding=((1, 2), (1, 2)),
        lhs_dilation=(2, 2),
        dimension_numbers=("NCHW", "OIHW", "NCHW"),
    )
    return out + bias.reshape(1, Cout, 1, 1)


if __name__ == "__main__":
    N, C, H, W = 2, 4, 16, 16
    Cout = C // 2

    key = jax.random.PRNGKey(0)
    kx, kw, kb = jax.random.split(key, 3)

    x = jax.random.normal(kx, (N, C, H, W), jnp.float32)
    # deterministic PyTorch-style uniform init: U(-1/sqrt(fan), 1/sqrt(fan))
    fan = C * 3 * 3
    bound = 1.0 / (fan ** 0.5)
    weight = jax.random.uniform(kw, (C, Cout, 3, 3), jnp.float32, -bound, bound)
    bias = jax.random.uniform(kb, (Cout,), jnp.float32, -bound, bound)

    # Kernel feeds the MXU in bf16 (f32 accumulation). Quantize the test inputs
    # to bf16-representable values so the f32 reference differs only by
    # accumulation order.
    x_q = x.astype(jnp.bfloat16).astype(jnp.float32)
    w_q = weight.astype(jnp.bfloat16).astype(jnp.float32)

    out = upsample_forward(x_q, w_q, bias)
    out = jax.block_until_ready(out)

    ref = _reference_forward(x_q, w_q, bias)
    assert out.shape == (N, Cout, 2 * H, 2 * W), out.shape
    max_err = float(jnp.max(jnp.abs(out - ref)))
    assert jnp.allclose(out, ref, atol=1e-3, rtol=1e-3), max_err

    print("KERNEL_OK")
</pallas_src>

<mosaic_0001>
module attributes {stable_mosaic.version = 11 : i64} {
  func.func @_upsample_phase_kernel(%arg0: i32, %arg1: i32, %arg2: memref<1x8x17x4xbf16, #tpu.memory_space<vmem>>, %arg3: memref<1x1x17x4xbf16, #tpu.memory_space<vmem>>, %arg4: memref<4x2xbf16, #tpu.memory_space<vmem>>, %arg5: memref<8x2xbf16, #tpu.memory_space<vmem>>, %arg6: memref<8x2xbf16, #tpu.memory_space<vmem>>, %arg7: memref<16x2xbf16, #tpu.memory_space<vmem>>, %arg8: memref<1x2xf32, #tpu.memory_space<vmem>>, %arg9: memref<1x8x2x16x4xf32, #tpu.memory_space<vmem>>) attributes {dimension_semantics = [#tpu.dimension_semantics<parallel>, #tpu.dimension_semantics<parallel>], iteration_bounds = array<i64: 2, 2>, scalar_prefetch = 0 : i64, scratch_operands = 0 : i64, tpu.core_type = #tpu.core_type<tc>, window_params = [{transform_indices = @transform_0, window_bounds = array<i64: 1, 8, 17, 4>}, {transform_indices = @transform_1, window_bounds = array<i64: 1, 1, 17, 4>}, {pipeline_mode = #tpu.pipeline_mode<synchronous>, transform_indices = @transform_2, window_bounds = array<i64: 4, 2>}, {pipeline_mode = #tpu.pipeline_mode<synchronous>, transform_indices = @transform_3, window_bounds = array<i64: 8, 2>}, {pipeline_mode = #tpu.pipeline_mode<synchronous>, transform_indices = @transform_4, window_bounds = array<i64: 8, 2>}, {pipeline_mode = #tpu.pipeline_mode<synchronous>, transform_indices = @transform_5, window_bounds = array<i64: 16, 2>}, {pipeline_mode = #tpu.pipeline_mode<synchronous>, transform_indices = @transform_6, window_bounds = array<i64: 1, 2>}, {transform_indices = @transform_7, window_bounds = array<i64: 1, 8, 2, 16, 4>}]} {
    %c0 = arith.constant 0 : index
    %c0_0 = arith.constant 0 : index
    %c0_1 = arith.constant 0 : index
    %c0_2 = arith.constant 0 : index
    %0 = vector.load %arg2[%c0, %c0_0, %c0_1, %c0_2] : memref<1x8x17x4xbf16, #tpu.memory_space<vmem>>, vector<1x8x17x4xbf16>
    %1 = vector.shape_cast %0 : vector<1x8x17x4xbf16> to vector<8x17x4xbf16>
    %2 = vector.extract_strided_slice %1 {offsets = [1, 0, 0], sizes = [7, 17, 4], strides = [1, 1, 1]} : vector<8x17x4xbf16> to vector<7x17x4xbf16>
    %c0_3 = arith.constant 0 : index
    %c0_4 = arith.constant 0 : index
    %c0_5 = arith.constant 0 : index
    %c0_6 = arith.constant 0 : index
    %3 = vector.load %arg3[%c0_3, %c0_4, %c0_5, %c0_6] : memref<1x1x17x4xbf16, #tpu.memory_space<vmem>>, vector<1x1x17x4xbf16>
    %4 = vector.shape_cast %3 : vector<1x1x17x4xbf16> to vector<1x17x4xbf16>
    %5 = tpu.concatenate %2, %4 in 0 : vector<7x17x4xbf16>, vector<1x17x4xbf16> -> vector<8x17x4xbf16>
    %6 = vector.extract_strided_slice %1 {offsets = [0, 0, 0], sizes = [8, 16, 4], strides = [1, 1, 1]} : vector<8x17x4xbf16> to vector<8x16x4xbf16>
    %7 = vector.extract_strided_slice %1 {offsets = [0, 1, 0], sizes = [8, 16, 4], strides = [1, 1, 1]} : vector<8x17x4xbf16> to vector<8x16x4xbf16>
    %8 = vector.extract_strided_slice %5 {offsets = [0, 0, 0], sizes = [8, 16, 4], strides = [1, 1, 1]} : vector<8x17x4xbf16> to vector<8x16x4xbf16>
    %9 = vector.extract_strided_slice %5 {offsets = [0, 1, 0], sizes = [8, 16, 4], strides = [1, 1, 1]} : vector<8x17x4xbf16> to vector<8x16x4xbf16>
    %c0_7 = arith.constant 0 : index
    %c0_8 = arith.constant 0 : index
    %10 = vector.load %arg8[%c0_7, %c0_8] : memref<1x2xf32, #tpu.memory_space<vmem>>, vector<1x2xf32>
    %11 = vector.shape_cast %6 : vector<8x16x4xbf16> to vector<128x4xbf16>
    %c0_9 = arith.constant 0 : index
    %c0_10 = arith.constant 0 : index
    %12 = vector.load %arg4[%c0_9, %c0_10] : memref<4x2xbf16, #tpu.memory_space<vmem>>, vector<4x2xbf16>
    %cst = arith.constant dense<0.000000e+00> : vector<128x2xf32>
    %13 = tpu.matmul %11, %12, %cst {dimension_numbers = #tpu.dot_dimension_numbers<[1], [0], [0], [1], [0, 0, 1, 1], [], []>} : vector<128x4xbf16>, vector<4x2xbf16>, vector<128x2xf32> -> vector<128x2xf32>
    %14 = vector.broadcast %10 : vector<1x2xf32> to vector<128x2xf32>
    %15 = arith.addf %13, %14 : vector<128x2xf32>
    %16 = vector.shape_cast %15 : vector<128x2xf32> to vector<8x16x2xf32>
    %17 = tpu.concatenate %6, %7 in 2 : vector<8x16x4xbf16>, vector<8x16x4xbf16> -> vector<8x16x8xbf16>
    %18 = vector.shape_cast %17 : vector<8x16x8xbf16> to vector<128x8xbf16>
    %c0_11 = arith.constant 0 : index
    %c0_12 = arith.constant 0 : index
    %19 = vector.load %arg5[%c0_11, %c0_12] : memref<8x2xbf16, #tpu.memory_space<vmem>>, vector<8x2xbf16>
    %cst_13 = arith.constant dense<0.000000e+00> : vector<128x2xf32>
    %20 = tpu.matmul %18, %19, %cst_13 {dimension_numbers = #tpu.dot_dimension_numbers<[1], [0], [0], [1], [0, 0, 1, 1], [], []>} : vector<128x8xbf16>, vector<8x2xbf16>, vector<128x2xf32> -> vector<128x2xf32>
    %21 = vector.broadcast %10 : vector<1x2xf32> to vector<128x2xf32>
    %22 = arith.addf %20, %21 : vector<128x2xf32>
    %23 = vector.shape_cast %22 : vector<128x2xf32> to vector<8x16x2xf32>
    %24 = tpu.concatenate %6, %8 in 2 : vector<8x16x4xbf16>, vector<8x16x4xbf16> -> vector<8x16x8xbf16>
    %25 = vector.shape_cast %24 : vector<8x16x8xbf16> to vector<128x8xbf16>
    %c0_14 = arith.constant 0 : index
    %c0_15 = arith.constant 0 : index
    %26 = vector.load %arg6[%c0_14, %c0_15] : memref<8x2xbf16, #tpu.memory_space<vmem>>, vector<8x2xbf16>
    %cst_16 = arith.constant dense<0.000000e+00> : vector<128x2xf32>
    %27 = tpu.matmul %25, %26, %cst_16 {dimension_numbers = #tpu.dot_dimension_numbers<[1], [0], [0], [1], [0, 0, 1, 1], [], []>} : vector<128x8xbf16>, vector<8x2xbf16>, vector<128x2xf32> -> vector<128x2xf32>
    %28 = vector.broadcast %10 : vector<1x2xf32> to vector<128x2xf32>
    %29 = arith.addf %27, %28 : vector<128x2xf32>
    %30 = vector.shape_cast %29 : vector<128x2xf32> to vector<8x16x2xf32>
    %31 = tpu.concatenate %6, %7, %8, %9 in 2 : vector<8x16x4xbf16>, vector<8x16x4xbf16>, vector<8x16x4xbf16>, vector<8x16x4xbf16> -> vector<8x16x16xbf16>
    %32 = vector.shape_cast %31 : vector<8x16x16xbf16> to vector<128x16xbf16>
    %c0_17 = arith.constant 0 : index
    %c0_18 = arith.constant 0 : index
    %33 = vector.load %arg7[%c0_17, %c0_18] : memref<16x2xbf16, #tpu.memory_space<vmem>>, vector<16x2xbf16>
    %cst_19 = arith.constant dense<0.000000e+00> : vector<128x2xf32>
    %34 = tpu.matmul %32, %33, %cst_19 {dimension_numbers = #tpu.dot_dimension_numbers<[1], [0], [0], [1], [0, 0, 1, 1], [], []>} : vector<128x16xbf16>, vector<16x2xbf16>, vector<128x2xf32> -> vector<128x2xf32>
    %35 = vector.broadcast %10 : vector<1x2xf32> to vector<128x2xf32>
    %36 = arith.addf %34, %35 : vector<128x2xf32>
    %37 = vector.shape_cast %36 : vector<128x2xf32> to vector<8x16x2xf32>
    %38 = tpu.concatenate %16, %23 in 2 : vector<8x16x2xf32>, vector<8x16x2xf32> -> vector<8x16x4xf32>
    %c0_20 = arith.constant 0 : index
    %c0_21 = arith.constant 0 : index
    %c0_22 = arith.constant 0 : index
    %c0_23 = arith.constant 0 : index
    %c0_24 = arith.constant 0 : index
    %39 = vector.load %arg9[%c0_20, %c0_21, %c0_22, %c0_23, %c0_24] : memref<1x8x2x16x4xf32, #tpu.memory_space<vmem>>, vector<1x8x1x16x4xf32>
    %40 = vector.shape_cast %39 : vector<1x8x1x16x4xf32> to vector<8x16x4xf32>
    %41 = vector.shape_cast %38 : vector<8x16x4xf32> to vector<1x8x1x16x4xf32>
    tpu.vector_store %arg9[%c0_20, %c0_21, %c0_22, %c0_23, %c0_24], %41 {strides = array<i32>} : memref<1x8x2x16x4xf32, #tpu.memory_space<vmem>>, vector<1x8x1x16x4xf32>,
    %42 = tpu.concatenate %30, %37 in 2 : vector<8x16x2xf32>, vector<8x16x2xf32> -> vector<8x16x4xf32>
    %c0_25 = arith.constant 0 : index
    %c0_26 = arith.constant 0 : index
    %c1 = arith.constant 1 : index
    %c0_27 = arith.constant 0 : index
    %c0_28 = arith.constant 0 : index
    %43 = vector.load %arg9[%c0_25, %c0_26, %c1, %c0_27, %c0_28] : memref<1x8x2x16x4xf32, #tpu.memory_space<vmem>>, vector<1x8x1x16x4xf32>
    %44 = vector.shape_cast %43 : vector<1x8x1x16x4xf32> to vector<8x16x4xf32>
    %45 = vector.shape_cast %42 : vector<8x16x4xf32> to vector<1x8x1x16x4xf32>
    tpu.vector_store %arg9[%c0_25, %c0_26, %c1, %c0_27, %c0_28], %45 {strides = array<i32>} : memref<1x8x2x16x4xf32, #tpu.memory_space<vmem>>, vector<1x8x1x16x4xf32>,
    return
  }
  func.func @transform_0(%arg0: i32, %arg1: i32) -> (i32, i32, i32, i32) {
    %c0_i32 = arith.constant 0 : i32
    %c0_i32_0 = arith.constant 0 : i32
    %c0_i32_1 = arith.constant 0 : i32
    return %arg0, %arg1, %c0_i32, %c0_i32_0 : i32, i32, i32, i32
  }
  func.func @transform_1(%arg0: i32, %arg1: i32) -> (i32, i32, i32, i32) {
    %c1_i32 = arith.constant 1 : i32
    %0 = arith.addi %arg1, %c1_i32 : i32
    %c8_i32 = arith.constant 8 : i32
    %1 = arith.muli %0, %c8_i32 : i32
    %c0_i32 = arith.constant 0 : i32
    %c0_i32_0 = arith.constant 0 : i32
    %c0_i32_1 = arith.constant 0 : i32
    return %arg0, %1, %c0_i32, %c0_i32_0 : i32, i32, i32, i32
  }
  func.func @transform_2(%arg0: i32, %arg1: i32) -> (i32, i32) {
    %c0_i32 = arith.constant 0 : i32
    %c0_i32_0 = arith.constant 0 : i32
    %c0_i32_1 = arith.constant 0 : i32
    return %c0_i32, %c0_i32_0 : i32, i32
  }
  func.func @transform_3(%arg0: i32, %arg1: i32) -> (i32, i32) {
    %c0_i32 = arith.constant 0 : i32
    %c0_i32_0 = arith.constant 0 : i32
    %c0_i32_1 = arith.constant 0 : i32
    return %c0_i32, %c0_i32_0 : i32, i32
  }
  func.func @transform_4(%arg0: i32, %arg1: i32) -> (i32, i32) {
    %c0_i32 = arith.constant 0 : i32
    %c0_i32_0 = arith.constant 0 : i32
    %c0_i32_1 = arith.constant 0 : i32
    return %c0_i32, %c0_i32_0 : i32, i32
  }
  func.func @transform_5(%arg0: i32, %arg1: i32) -> (i32, i32) {
    %c0_i32 = arith.constant 0 : i32
    %c0_i32_0 = arith.constant 0 : i32
    %c0_i32_1 = arith.constant 0 : i32
    return %c0_i32, %c0_i32_0 : i32, i32
  }
  func.func @transform_6(%arg0: i32, %arg1: i32) -> (i32, i32) {
    %c0_i32 = arith.constant 0 : i32
    %c0_i32_0 = arith.constant 0 : i32
    %c0_i32_1 = arith.constant 0 : i32
    return %c0_i32, %c0_i32_0 : i32, i32
  }
  func.func @transform_7(%arg0: i32, %arg1: i32) -> (i32, i32, i32, i32, i32) {
    %c0_i32 = arith.constant 0 : i32
    %c0_i32_0 = arith.constant 0 : i32
    %c0_i32_1 = arith.constant 0 : i32
    %c0_i32_2 = arith.constant 0 : i32
    return %arg0, %arg1, %c0_i32, %c0_i32_0, %c0_i32_1 : i32, i32, i32, i32, i32
  }
}

</mosaic_0001>

<bundles_post_ra>
// kernel: upsample_forward.1
= control target key start
LH: loop header
LB: loop body
LE: loop exit
PB: predicated region body
PF: predicated region fallthrough
CT: control target
= control target key end

     0   :  { %s1590_s24 = smov 0   ;;  %s1592_s25 = smov 0   ;;  %s2092_s0 = inlined_call_operand.vmem [shape: bf16[2,17,17,4], index: 0, kind: input, shape index: {}, may-alias: {0,1}]   ;;  %s2093_s1 = inlined_call_operand.vmem [shape: bf16[2,17,17,4], index: 1, kind: input, shape index: {}, may-alias: {0,1}]   ;;  %s2094_s2 = inlined_call_operand.vmem [shape: bf16[4,2], index: 2, kind: input, shape index: {}]   ;;  %s2095_s3 = inlined_call_operand.vmem [shape: bf16[8,2], index: 3, kind: input, shape index: {}]   ;;  %s2096_s4 = inlined_call_operand.vmem [shape: bf16[8,2], index: 4, kind: input, shape index: {}]   ;;  %s2097_s5 = inlined_call_operand.vmem [shape: bf16[16,2], index: 5, kind: input, shape index: {}]   ;;  %s2098_s6 = inlined_call_operand.vmem [shape: f32[1,2], index: 6, kind: input, shape index: {}]   ;;  %s2099_s7 = inlined_call_operand.vmem [shape: f32[2,16,2,16,4], index: 7, kind: output, shape index: {}]  }
   0x1   :  { %s1594_s26 = smov 0   ;;  %s1596_s27 = smov 0  }
   0x2   :  { %s1598_s28 = smov 0  }
   0x3 LB: > { %s26_s29 = sadd.s32 1, %s1536_s26  ;;  %s29_s30 = sadd.s32 1, %s1540_s27  ;;  %s1544_s28 = sphi %s1598_s28, %s17_s28   ;;  %s1540_s27 = sphi %s1596_s27, %s2103_s27   ;;  %s1536_s26 = sphi %s1594_s26, %s2102_s26   ;;  %s1532_s25 = sphi %s1592_s25, %s2101_s25   ;;  %s1528_s24 = sphi %s1590_s24, %s2100_s24  }
   0x4   : > { %p27_p0 = scmp.ge.s32.totalorder %s26_s29, 2  ;;  %p1343_p1 = scmp.ge.s32.totalorder %s1544_s28, 1 }
   0x5   : > { %p293_p2 = scmp.lt.s32.totalorder %s1544_s28, 5 }
   0x6   : > { %s2105_s29 = smov (%p27_p0, %s26_s29), 0  ;;  %s2107_s30 = smov (!%p27_p0, %s29_s30), %s1540_s27 }
   0x7   : > { %p294_p3 = pnand %p1343_p1, %p293_p2  ;;  %p31_p4 = scmp.ge.s32.totalorder %s2107_s30, 2 }
   0x8   : > { %s1620_s8 = sshll.u32 (!%p294_p3), %s1528_s24, 3  ;;  %p357_p5 = scmp.lt.s32.totalorder (!%p294_p3), %s1532_s25, 1 }
   0x9   : > { %s2109_s30 = smov (%p31_p4, %s2107_s30), 0  ;;  %297 = sbr.rel (%p294_p3) target bundleno = 528 (0x210), region = 48 }
   0xa   : > { %p359_p6 = scmp.lt.s32.totalorder (!%p294_p3), %s1620_s8, 16  ;;  %p388_p7 = scmp.lt.s32.totalorder (!%p294_p3), %s1620_s8, 15 }
   0xb   : > { %s1447_s21 = sadd.s32 (!%p294_p3), 8, %s1620_s8  ;;  %s1546_s22 = smov (!%p294_p3), 8  }
   0xc   : > { %p376_p8 = scmp.lt.s32.totalorder (!%p294_p3), %s1447_s21, 16 }
   0xe   : > { %s2111_s25 = smov (!%p357_p5, %s1532_s25), 1  ;;  %vm571_vm0 = vsmask.f32 7424  ;;  %s2113_s21 = smov (!%p376_p8, %s1447_s21), 16  ;;  %vm710_vm1 = vcmask 1043456   ;;  %vm469_vm2 = vcmask 31744  }
   0xf   : > { %s360_s9 = scalar_select %p359_p6, %s1620_s8, 16  ;;  %vm693_vm3 = vcmask 64512   ;;  %vm932_vm4 = vcmask 97280   ;;  %vm957_vm5 = vcmask 130048   ;;  %vm494_vm6 = vcmask 1041408  }
  0x10   : > { %s1459_s10 = smul.u32 51, %s2111_s25  ;;  %s1350_s12 = sshll.u32 %s2111_s25, 6  ;;  %vm1087_vm7 = vcmask 15360  }
  0x11   : > { %s1458_s11 = smul.u32 3, %s360_s9  ;;  %s1548_s9 = smov 12  }
  0x12   : > { %s389_s13 = scalar_select %p388_p7, %s1620_s8, 15 }
  0x13   : > { %s363_s14 = sadd.s32 %s1459_s10, %s1458_s11  ;;  %s1460_s23 = smul.u32 3, %s2113_s21 }
  0x14   : > { %s1345_s15 = sshll.u32 %s363_s14, 2  ;;  %s1349_s16 = sshll.u32 %s389_s13, 2 }
  0x15   : > { %s1635_s19 = scalar_lea.vmem %s2092_s0, %s1345_s15  ;;  %s1637_s20 = sadd.s32 %s1350_s12, %s1349_s16 }
  0x16   : > { %v1640_v0 = vld [vmem:[%s1635_s19] sm:$0xff]  ;;  %v399_v1 = vld [vmem:[%s1635_s19 + $0x8] sm:$0x1]  ;;  %v1644_v2 = vld [vmem:[%s1635_s19 + $0xc] sm:$0xff]  ;;  %s1668_s24 = sadd.s32 %s1460_s23, %s1459_s10  ;;  %s1547_s8 = smov 4  }
  0x17   : > { %v555_v3 = vunpack.c.l.b16 %v399_v1  ;;  %v402_v4 = vld [vmem:[%s1635_s19 + $0x14] sm:$0x1]  ;;  %v1648_v5 = vld [vmem:[%s1635_s19 + $0x18] sm:$0xff]  ;;  %v405_v6 = vld [vmem:[%s1635_s19 + $0x20] sm:$0x1]  ;;  %v572_v7 = vshrl.u32 %v1640_v0, 16 }
  0x18   : > { %v574_v8 = vshll.u32 %v1640_v0, 16  ;;  %v556_v9 = vunpack.c.l.b16 %v402_v4  ;;  %v583_v10 = vshrl.u32 %v1644_v2, 16  ;;  %v408_v11 = vld [vmem:[%s1635_s19 + $0x2c] sm:$0x1]  ;;  %v585_v13 = vshll.u32 %v1644_v2, 16  ;;  %871 = vrot.lane.b32.xlu2 %v1648_v5, %s1546_s22  ;;  %v1661_v16 = vld [vmem:[%s1635_s19 + $0x24] sm:$0xff] }
  0x19   : > { %v563_v12 = vpack.c.b16 %v555_v3, %v555_v3  ;;  %v557_v14 = vunpack.c.l.b16 %v405_v6  ;;  %v594_v15 = vshrl.u32 %v1648_v5, 16  ;;  %v596_v19 = vshll.u32 %v1648_v5, 16  ;;  %v411_v43 = vld [vmem:[%s1635_s19 + $0x38] sm:$0x1]  ;;  %v1682_v45 = vld [vmem:[%s1635_s19 + $0x30] sm:$0xff]  ;;  %v1694_v55 = vld [vmem:[%s1635_s19 + $0x3c] sm:$0xff] }
  0x1a   : > { %v576_v17 = vrot.slane %v574_v8, 1  ;;  %v564_v18 = vpack.c.b16 %v556_v9, %v556_v9  ;;  %v558_v20 = vunpack.c.l.b16 %v408_v11  ;;  %v587_v22 = vrot.slane %v585_v13, 1  ;;  %v414_v52 = vld [vmem:[%s1635_s19 + $0x44] sm:$0x1]  ;;  %v417_v57 = vld [vmem:[%s1635_s19 + $0x50] sm:$0x1] }
  0x1b   : > { %v579_v21 = vshll.u32 %v563_v12, 16  ;;  %v565_v23 = vpack.c.b16 %v557_v14, %v557_v14  ;;  %v598_v26 = vrot.slane %v596_v19, 1  ;;  %v607_v31 = vshll.u32 %v1661_v16, 16  ;;  %v1702_v59 = vld [vmem:[%s1635_s19 + $0x48] sm:$0xff]  ;;  %s1347_s11 = sshll.u32 %s1668_s24, 2  ;;  %s1549_s24 = smov 2  }
  0x1c   : > { %v577_v24 = vor.u32 %v576_v17, %v572_v7  ;;  %v590_v25 = vshll.u32 %v564_v18, 16  ;;  %v566_v27 = vpack.c.b16 %v558_v20, %v558_v20  ;;  %v588_v29 = vor.u32 %v587_v22, %v583_v10  ;;  %v692_v10 = vld [vmem:[%s2095_s3] sm:$0xf]  ;;  %v420_v18 = vld [vmem:[%s1635_s19 + $0x5c] sm:$0x1]  ;;  %v1725_v20 = vld [vmem:[%s1635_s19 + $0x54] sm:$0xff]  ;;  %s382_s14 = scalar_lea.vmem %s2093_s1, %s1347_s11 }
  0x1d   : > { %v581_v28 = vrot.slane %v579_v21, 1  ;;  %v601_v30 = vshll.u32 %v565_v23, 16  ;;  %v599_v33 = vor.u32 %v598_v26, %v594_v15  ;;  %v605_v38 = vshrl.u32 %v1661_v16, 16 }
  0x1e   : > { %v592_v32 = vrot.slane %v590_v25, 1  ;;  %v609_v39 = vrot.slane %v607_v31, 1  ;;  %v612_v40 = vshll.u32 %v566_v27, 16  ;;  %v559_v46 = vunpack.c.l.b16 %v411_v43  ;;  %v1456_v31 = vld [vmem:[%s382_s14] sm:$0xff] }
  0x1f   : > { %v582_v34 = vsel %vm571_vm0, %v577_v24, %v581_v28  ;;  %v603_v35 = vrot.slane %v601_v30, 1  ;;  %v618_v48 = vshll.u32 %v1682_v45, 16  ;;  %v616_v49 = vshrl.u32 %v1682_v45, 16  ;;  %v423_v30 = vld [vmem:[%s382_s14 + $0x8] sm:$0x1] }
  0x20   : > { %660 = vrot.lane.b32.xlu0 %v582_v34, %s1547_s8  ;;  %v593_v36 = vsel %vm571_vm0, %v588_v29, %v592_v32  ;;  %v610_v41 = vor.u32 %v609_v39, %v605_v38  ;;  %v614_v42 = vrot.slane %v612_v40, 1  ;;  %v567_v47 = vpack.c.b16 %v559_v46, %v559_v46  ;;  %v1457_v38 = vld [vmem:[%s2097_s5] sm:$0xff] }
  0x21   : > { %900 = vrot.lane.b32.xlu1 %v593_v36, %s1548_s9  ;;  %v604_v37 = vsel %vm571_vm0, %v599_v33, %v603_v35  ;;  %v620_v50 = vrot.slane %v618_v48, 1  ;;  %v560_v56 = vunpack.c.l.b16 %v414_v52  ;;  %v561_v60 = vunpack.c.l.b16 %v417_v57  ;;  %981 = vmatpush.bf16.msra.mxu3 %v1457_v38  ;;  %v800_v46 = vld [vmem:[%s2096_s4] sm:$0xf] }
  0x22   : > { %902 = vrot.lane.b32.xlu2 %v604_v37, %s1548_s9  ;;  %v615_v44 = vsel %vm571_vm0, %v610_v41, %v614_v42  ;;  %v623_v51 = vshll.u32 %v567_v47, 16  ;;  %v629_v62 = vshll.u32 %v1694_v55, 16  ;;  %v640_v1 = vshll.u32 %v1702_v59, 16 }
  0x23   : > { %v621_v53 = vor.u32 %v620_v50, %v616_v49  ;;  %v568_v61 = vpack.c.b16 %v560_v56, %v560_v56  ;;  %v569_v63 = vpack.c.b16 %v561_v60, %v561_v60  ;;  %v627_v3 = vshrl.u32 %v1694_v55, 16 }
  0x24   : > { %v625_v54 = vrot.slane %v623_v51, 1  ;;  %v631_v4 = vrot.slane %v629_v62, 1  ;;  %v638_v7 = vshrl.u32 %v1702_v59, 16  ;;  %v642_v8 = vrot.slane %v640_v1, 1 }
  0x25   : > { %v634_v6 = vshll.u32 %v568_v61, 16  ;;  %v645_v9 = vshll.u32 %v569_v63, 16  ;;  %v712_v13 = vsel %vm710_vm1, %v692_v10, 0  ;;  %v562_v21 = vunpack.c.l.b16 %v420_v18 }
  0x26   : > { %v626_v58 = vsel %vm571_vm0, %v621_v53, %v625_v54  ;;  %v632_v11 = vor.u32 %v631_v4, %v627_v3  ;;  %721 = vmatpush.bf16.msra.mxu1 %v712_v13  ;;  %v643_v14 = vor.u32 %v642_v8, %v638_v7  ;;  %v651_v23 = vshll.u32 %v1725_v20, 16 }
  0x27   : > { %v636_v12 = vrot.slane %v634_v6, 1  ;;  %v647_v15 = vrot.slane %v645_v9, 1  ;;  %v570_v22 = vpack.c.b16 %v562_v21, %v562_v21  ;;  %v649_v24 = vshrl.u32 %v1725_v20, 16 }
  0x28   : > { %869 = vrot.lane.b32.xlu0 %v1644_v2, %s1546_s22  ;;  %v653_v25 = vrot.slane %v651_v23, 1  ;;  %v886_v32 = vunpack.c.l.b16 %v423_v30  ;;  %v891_v34 = vshll.u32 %v1456_v31, 16  ;;  %v889_v35 = vshrl.u32 %v1456_v31, 16 }
  0x29   : > { %662 = vrot.lane.b32.xlu1 %v593_v36, %s1547_s8  ;;  %v637_v17 = vsel %vm571_vm0, %v632_v11, %v636_v12  ;;  %v648_v19 = vsel %vm571_vm0, %v643_v14, %v647_v15  ;;  %v656_v26 = vshll.u32 %v570_v22, 16  ;;  %v818_v47 = vsel %vm710_vm1, %v800_v46, 0  ;;  %v425_v14 = vld [vmem:[%s2094_s2] sm:$0x3] }
  0x2a   : > { %904 = vrot.lane.b32.xlu2 %v615_v44, %s1548_s9  ;;  %v654_v27 = vor.u32 %v653_v25, %v649_v24  ;;  %v887_v33 = vpack.c.b16 %v886_v32, %v886_v32  ;;  %v893_v36 = vrot.slane %v891_v34, 1  ;;  %827 = vmatpush.bf16.msra.mxu2 %v818_v47  ;;  %v496_v15 = vsel %vm494_vm6, %v425_v14, 0 }
  0x2b   : > { %v658_v28 = vrot.slane %v656_v26, 1  ;;  %505 = vmatpush.bf16.msra.mxu0 %v496_v15 }
  0x2c   : > { %v894_v39 = vor.u32 %v893_v36, %v889_v35 }
  0x2d   : > { %v659_v29 = vsel %vm571_vm0, %v654_v27, %v658_v28 }
  0x2e   : > { %1384 = vmatmul.msk.bf16.vlgmr.msra.gmra.mxu0 %vm469_vm2, %v1640_v0 }
  0x30   : > { %664 = vrot.lane.b32.xlu0 %v604_v37, %s1547_s8  ;;  %v896_v37 = vshll.u32 %v887_v33, 16 }
  0x31   : > { %873 = vrot.lane.b32.xlu1 %v1661_v16, %s1546_s22 }
  0x32   : > { %875 = vrot.lane.b32.xlu2 %v1682_v45, %s1546_s22  ;;  %v898_v40 = vrot.slane %v896_v37, 1 }
  0x34   : > { %v899_v41 = vsel %vm571_vm0, %v894_v39, %v898_v40 }
  0x38   : > { %768 = vrot.lane.b32.xlu0 %v1644_v2, %s1547_s8 }
  0x39   : > { %666 = vrot.lane.b32.xlu1 %v615_v44, %s1547_s8 }
  0x3a   : > { %668 = vrot.lane.b32.xlu2 %v626_v58, %s1547_s8 }
  0x3e   : > { %1385 = vmatmul.msk.bf16.gmra.mxu0 %vm469_vm2, %v1644_v2 }
  0x40   : > { %906 = vrot.lane.b32.xlu0 %v626_v58, %s1548_s9 }
  0x41   : > { %770 = vrot.lane.b32.xlu1 %v1648_v5, %s1547_s8 }
  0x42   : > { %772 = vrot.lane.b32.xlu2 %v1661_v16, %s1547_s8 }
  0x48   : > { %877 = vrot.lane.b32.xlu0 %v1694_v55, %s1546_s22 }
  0x49   : > { %908 = vrot.lane.b32.xlu1 %v637_v17, %s1548_s9 }
  0x4a   : > { %910 = vrot.lane.b32.xlu2 %v648_v19, %s1548_s9 }
  0x4e   : > { %1386 = vmatmul.msk.bf16.gmra.mxu0 %vm469_vm2, %v1648_v5 }
  0x50   : > { %670 = vrot.lane.b32.xlu0 %v637_v17, %s1547_s8 }
  0x51   : > { %879 = vrot.lane.b32.xlu1 %v1702_v59, %s1546_s22 }
  0x52   : > { %881 = vrot.lane.b32.xlu2 %v1725_v20, %s1546_s22 }
  0x58   : > { %774 = vrot.lane.b32.xlu0 %v1682_v45, %s1547_s8 }
  0x59   : > { %672 = vrot.lane.b32.xlu1 %v648_v19, %s1547_s8 }
  0x5a   : > { %674 = vrot.lane.b32.xlu2 %v659_v29, %s1547_s8 }
  0x5e   : > { %1387 = vmatmul.msk.bf16.gmra.mxu0 %vm469_vm2, %v1661_v16 }
  0x60   : > { %912 = vrot.lane.b32.xlu0 %v659_v29, %s1548_s9 }
  0x61   : > { %776 = vrot.lane.b32.xlu1 %v1694_v55, %s1547_s8 }
  0x62   : > { %778 = vrot.lane.b32.xlu2 %v1702_v59, %s1547_s8 }
  0x68   : > { %883 = vrot.lane.b32.xlu0 %v1456_v31, %s1546_s22 }
  0x69   : > { %914 = vrot.lane.b32.xlu1 %v899_v41, %s1548_s9 }
  0x6e   : > { %1388 = vmatmul.msk.bf16.gmra.mxu0 %vm469_vm2, %v1682_v45 }
  0x70   : > { %780 = vrot.lane.b32.xlu0 %v1725_v20, %s1547_s8 }
  0x71   : > { %782 = vrot.lane.b32.xlu1 %v1456_v31, %s1547_s8  ;;  %s1351_s8 = sshll.u32 %s1637_s20, 3 }
  0x72   : > { %v872_v48 = vpop.permute.xlu2 %871  ;;  %s1913_s10 = scalar_lea.vmem %s2099_s7, %s1351_s8 }
  0x7c   : > { %v903_v54 = vpop.permute.xlu2 %902 }
  0x7e   : > { %1389 = vmatmul.msk.bf16.gmra.mxu0 %vm469_vm2, %v1694_v55 }
  0x84   : > { %v905_v60 = vpop.permute.xlu2 %904 }
  0x8c   : > { %v876_v4 = vpop.permute.xlu2 %875 }
  0x8e   : > { %1390 = vmatmul.msk.bf16.gmra.mxu0 %vm469_vm2, %v1702_v59 }
  0x92   : > { %v661_v42 = vpop.permute.xlu0 %660 }
  0x93   : > { %v677_v43 = vsel %vm469_vm2, %v1640_v0, %v661_v42  ;;  %v901_v44 = vpop.permute.xlu1 %900 }
  0x94   : > { %1392 = vmatmul.msk.bf16.vlgmr.msra.gmra.mxu1 %vm693_vm3, %v677_v43  ;;  %v669_v11 = vpop.permute.xlu2 %668 }
  0x95   : > { %v685_v24 = vsel %vm469_vm2, %v1682_v45, %v669_v11 }
  0x9a   : > { %v870_v49 = vpop.permute.xlu0 %869 }
  0x9b   : > { %v917_v50 = vsel %vm693_vm3, %v677_v43, %v870_v49  ;;  %v663_v51 = vpop.permute.xlu1 %662 }
  0x9c   : > { %v934_v52 = vsel %vm932_vm4, %v917_v50, %v901_v44  ;;  %v679_v53 = vsel %vm469_vm2, %v1644_v2, %v663_v51  ;;  %v773_v17 = vpop.permute.xlu2 %772 }
  0x9d   : > { %1416 = vmatmul.msk.bf16.vlgmr.msra.gmra.mxu3 %vm957_vm5, %v934_v52  ;;  %v919_v58 = vsel %vm693_vm3, %v679_v53, %v872_v48  ;;  %v789_v19 = vsel %vm469_vm2, %v1648_v5, %v773_v17 }
  0x9e   : > { %v936_v63 = vsel %vm932_vm4, %v919_v58, %v903_v54  ;;  %1391 = vmatmul.msk.bf16.gmra.mxu0 %vm469_vm2, %v1725_v20 }
  0xa2   : > { %v665_v56 = vpop.permute.xlu0 %664 }
  0xa3   : > { %v874_v57 = vpop.permute.xlu1 %873  ;;  %v681_v3 = vsel %vm469_vm2, %v1648_v5, %v665_v56 }
  0xa4   : > { %1393 = vmatmul.msk.bf16.gmra.mxu1 %vm693_vm3, %v679_v53  ;;  %v921_v7 = vsel %vm693_vm3, %v681_v3, %v874_v57  ;;  %v911_v33 = vpop.permute.xlu2 %910 }
  0xa5   : > { %v938_v9 = vsel %vm932_vm4, %v921_v7, %v905_v60 }
  0xaa   : > { %v769_v61 = vpop.permute.xlu0 %768 }
  0xab   : > { %v785_v62 = vsel %vm469_vm2, %v1640_v0, %v769_v61  ;;  %v667_v1 = vpop.permute.xlu1 %666 }
  0xac   : > { %1404 = vmatmul.msk.bf16.vlgmr.msra.gmra.mxu2 %vm693_vm3, %v785_v62  ;;  %v683_v12 = vsel %vm469_vm2, %v1661_v16, %v667_v1  ;;  %v882_v36 = vpop.permute.xlu2 %881 }
  0xad   : > { %1417 = vmatmul.msk.bf16.gmra.mxu3 %vm957_vm5, %v936_v63  ;;  %v923_v18 = vsel %vm693_vm3, %v683_v12, %v876_v4 }
  0xb2   : > { %v907_v10 = vpop.permute.xlu0 %906 }
  0xb3   : > { %v771_v6 = vpop.permute.xlu1 %770  ;;  %v940_v21 = vsel %vm932_vm4, %v923_v18, %v907_v10 }
  0xb4   : > { %1394 = vmatmul.msk.bf16.gmra.mxu1 %vm693_vm3, %v681_v3  ;;  %v787_v8 = vsel %vm469_vm2, %v1644_v2, %v771_v6  ;;  %v675_v39 = vpop.permute.xlu2 %674 }
  0xb5   : > { %v691_v40 = vsel %vm469_vm2, %v1725_v20, %v675_v39 }
  0xba   : > { %v878_v13 = vpop.permute.xlu0 %877 }
  0xbb   : > { %v909_v22 = vpop.permute.xlu1 %908  ;;  %v925_v27 = vsel %vm693_vm3, %v685_v24, %v878_v13 }
  0xbc   : > { %1405 = vmatmul.msk.bf16.gmra.mxu2 %vm693_vm3, %v787_v8  ;;  %v942_v28 = vsel %vm932_vm4, %v925_v27, %v909_v22  ;;  %v779_v53 = vpop.permute.xlu2 %778 }
  0xbd   : > { %1418 = vmatmul.msk.bf16.gmra.mxu3 %vm957_vm5, %v938_v9  ;;  %v795_v56 = vsel %vm469_vm2, %v1694_v55, %v779_v53 }
  0xc2   : > { %v671_v23 = vpop.permute.xlu0 %670 }
  0xc3   : > { %v880_v25 = vpop.permute.xlu1 %879  ;;  %v687_v30 = vsel %vm469_vm2, %v1694_v55, %v671_v23 }
  0xc4   : > { %1395 = vmatmul.msk.bf16.gmra.mxu1 %vm693_vm3, %v683_v12  ;;  %v927_v32 = vsel %vm693_vm3, %v687_v30, %v880_v25 }
  0xc5   : > { %v944_v2 = vsel %vm932_vm4, %v927_v32, %v911_v33 }
  0xca   : > { %v775_v26 = vpop.permute.xlu0 %774 }
  0xcb   : > { %v791_v0 = vsel %vm469_vm2, %v1661_v16, %v775_v26  ;;  %v673_v29 = vpop.permute.xlu1 %672  ;;  %v1841_v16 = vld [vmem:[%s2098_s6] ss:$0 sm:$0xff] }
  0xcc   : > { %1406 = vmatmul.msk.bf16.gmra.mxu2 %vm693_vm3, %v789_v19  ;;  %v689_v35 = vsel %vm469_vm2, %v1702_v59, %v673_v29  ;;  %v507_v19 = vpop.f32.mrf.mxu0 }
  0xcd   : > { %1419 = vmatmul.msk.bf16.gmra.mxu3 %vm957_vm5, %v940_v21  ;;  %v929_v37 = vsel %vm693_vm3, %v689_v35, %v882_v36 }
  0xd2   : > { %v913_v38 = vpop.permute.xlu0 %912 }
  0xd3   : > { %v777_v31 = vpop.permute.xlu1 %776  ;;  %v946_v5 = vsel %vm932_vm4, %v929_v37, %v913_v38 }
  0xd4   : > { %1396 = vmatmul.msk.bf16.gmra.mxu1 %vm693_vm3, %v685_v24  ;;  %v793_v34 = vsel %vm469_vm2, %v1682_v45, %v777_v31 }
  0xda   : > { %v884_v41 = vpop.permute.xlu0 %883 }
  0xdb   : > { %v931_v42 = vsel %vm693_vm3, %v691_v40, %v884_v41  ;;  %v915_v43 = vpop.permute.xlu1 %914 }
  0xdc   : > { %1407 = vmatmul.msk.bf16.gmra.mxu2 %vm693_vm3, %v791_v0  ;;  %v948_v44 = vsel %vm932_vm4, %v931_v42, %v915_v43 }
  0xdd   : > { %1420 = vmatmul.msk.bf16.gmra.mxu3 %vm957_vm5, %v942_v28 }
  0xe2   : > { %v781_v1 = vpop.permute.xlu0 %780 }
  0xe3   : > { %v797_v4 = vsel %vm469_vm2, %v1702_v59, %v781_v1  ;;  %v783_v12 = vpop.permute.xlu1 %782 }
  0xe4   : > { %1397 = vmatmul.msk.bf16.gmra.mxu1 %vm693_vm3, %v687_v30  ;;  %v799_v14 = vsel %vm469_vm2, %v1725_v20, %v783_v12  ;;  %v509_v20 = vpop.f32.mrf.mxu0 }
  0xec   : > { %1408 = vmatmul.msk.bf16.gmra.mxu2 %vm693_vm3, %v793_v34  ;;  %v1896_v29 = vpop.f32.mrf.mxu0 }
  0xed   : > { %1421 = vmatmul.msk.bf16.gmra.mxu3 %vm957_vm5, %v944_v2 }
  0xf4   : > { %1398 = vmatmul.msk.bf16.gmra.mxu1 %vm693_vm3, %v689_v35  ;;  %v514_v2 = vpop.f32.mrf.mxu0 }
  0xfc   : > { %1409 = vmatmul.msk.bf16.gmra.mxu2 %vm693_vm3, %v795_v56 }
  0xfd   : > { %1422 = vmatmul.msk.bf16.gmra.mxu3 %vm957_vm5, %v946_v5  ;;  %v508_v5 = vadd.f32 %v1841_v16, %v507_v19 }
 0x104   : > { %1399 = vmatmul.msk.bf16.gmra.mxu1 %vm693_vm3, %v691_v40 }
 0x10c   : > { %1410 = vmatmul.msk.bf16.gmra.mxu2 %vm693_vm3, %v797_v4 }
 0x10d   : > { %1423 = vmatmul.msk.bf16.gmra.mxu3 %vm957_vm5, %v948_v44 }
 0x111   : > { %v723_v46 = vpop.f32.mrf.mxu1 }
 0x112   : > { %v724_v47 = vadd.f32 %v1841_v16, %v723_v46  ;;  %v1919_v46 = vpop.f32.mrf.mxu0 }
 0x114   : > { %1039 = vrot.lane.b32.xlu2 %v724_v47, %s1549_s24 }
 0x119   : > { %v725_v48 = vpop.f32.mrf.mxu1 }
 0x11a   : > { %v726_v45 = vadd.f32 %v1841_v16, %v725_v48 }
 0x11c   : > { %1041 = vrot.lane.b32.xlu0 %v726_v45, %s1549_s24  ;;  %1411 = vmatmul.msk.bf16.gmra.mxu2 %vm693_vm3, %v799_v14 }
 0x120   : > { %v983_v49 = vpop.f32.mrf.mxu3 }
 0x121   : > { %v984_v50 = vadd.f32 %v1841_v16, %v983_v49  ;;  %v728_v51 = vpop.f32.mrf.mxu1 }
 0x122   : > { %v729_v52 = vadd.f32 %v1841_v16, %v728_v51 }
 0x124   : > { %1043 = vrot.lane.b32.xlu1 %v729_v52, %s1549_s24  ;;  %1136 = vrot.lane.b32.xlu0 %v984_v50, %s1549_s24  ;;  %v1928_v52 = vpop.f32.mrf.mxu0 }
 0x128   : > { %v985_v54 = vpop.f32.mrf.mxu3 }
 0x129   : > { %v986_v57 = vadd.f32 %v1841_v16, %v985_v54  ;;  %v730_v58 = vpop.f32.mrf.mxu1 }
 0x12a   : > { %v731_v60 = vadd.f32 %v1841_v16, %v730_v58  ;;  %v515_v58 = vadd.f32 %v1841_v16, %v514_v2 }
 0x12c   : > { %1045 = vrot.lane.b32.xlu2 %v731_v60, %s1549_s24  ;;  %1138 = vrot.lane.b32.xlu1 %v986_v57, %s1549_s24 }
 0x12f   : > { %v1892_v28 = vpop.f32.mrf.mxu2 }
 0x130   : > { %v988_v61 = vpop.f32.mrf.mxu3 }
 0x131   : > { %v989_v62 = vadd.f32 %v1841_v16, %v988_v61  ;;  %v733_v63 = vpop.f32.mrf.mxu1  ;;  %v522_v61 = vpop.f32.mrf.mxu0 }
 0x132   : > { %v734_v55 = vadd.f32 %v1841_v16, %v733_v63 }
 0x134   : > { %1140 = vrot.lane.b32.xlu2 %v989_v62, %s1549_s24  ;;  %1047 = vrot.lane.b32.xlu0 %v734_v55, %s1549_s24 }
 0x137   : > { %v1902_v34 = vpop.f32.mrf.mxu2 }
 0x138   : > { %v990_v3 = vpop.f32.mrf.mxu3 }
 0x139   : > { %v991_v6 = vadd.f32 %v1841_v16, %v990_v3  ;;  %v735_v7 = vpop.f32.mrf.mxu1  ;;  %v524_v12 = vpop.f32.mrf.mxu0 }
 0x13a   : > { %v736_v8 = vadd.f32 %v1841_v16, %v735_v7 }
 0x13c   : > { %1049 = vrot.lane.b32.xlu1 %v736_v8, %s1549_s24  ;;  %1142 = vrot.lane.b32.xlu0 %v991_v6, %s1549_s24  ;;  %v510_v6 = vadd.f32 %v1841_v16, %v509_v20 }
 0x13f   : > { %v834_v41 = vpop.f32.mrf.mxu2 }
 0x140   : > { %v993_v9 = vpop.f32.mrf.mxu3  ;;  %v835_v7 = vadd.f32 %v1841_v16, %v834_v41 }
 0x141   : > { %v994_v10 = vadd.f32 %v1841_v16, %v993_v9  ;;  %v738_v11 = vpop.f32.mrf.mxu1 }
 0x142   : > { %v739_v59 = vadd.f32 %v1841_v16, %v738_v11 }
 0x144   : > { %1051 = vrot.lane.b32.xlu2 %v739_v59, %s1549_s24  ;;  %1144 = vrot.lane.b32.xlu1 %v994_v10, %s1549_s24 }
 0x147   : > { %v1926_v51 = vpop.f32.mrf.mxu2 }
 0x148   : > { %v995_v13 = vpop.f32.mrf.mxu3 }
 0x149   : > { %v996_v15 = vadd.f32 %v1841_v16, %v995_v13  ;;  %v740_v17 = vpop.f32.mrf.mxu1 }
 0x14a   : > { %v741_v18 = vadd.f32 %v1841_v16, %v740_v17  ;;  %v830_v17 = vadd.f32 %v1841_v16, %v1892_v28 }
 0x14c   : > { %1146 = vrot.lane.b32.xlu2 %v996_v15, %s1549_s24  ;;  %1053 = vrot.lane.b32.xlu0 %v741_v18, %s1549_s24  ;;  %v513_v15 = vadd.f32 %v1841_v16, %v1896_v29 }
 0x14f   : > { %v1937_v60 = vpop.f32.mrf.mxu2 }
 0x150   : > { %v998_v21 = vpop.f32.mrf.mxu3 }
 0x151   : > { %v999_v22 = vadd.f32 %v1841_v16, %v998_v21  ;;  %v743_v23 = vpop.f32.mrf.mxu1 }
 0x152   : > { %v744_v24 = vadd.f32 %v1841_v16, %v743_v23 }
 0x154   : > { %1055 = vrot.lane.b32.xlu1 %v744_v24, %s1549_s24  ;;  %1148 = vrot.lane.b32.xlu0 %v999_v22, %s1549_s24 }
 0x157   : > { %v841_v10 = vpop.f32.mrf.mxu2 }
 0x158   : > { %v1000_v25 = vpop.f32.mrf.mxu3  ;;  %v842_v2 = vadd.f32 %v1841_v16, %v841_v10 }
 0x159   : > { %v1001_v26 = vadd.f32 %v1841_v16, %v1000_v25  ;;  %v745_v27 = vpop.f32.mrf.mxu1  ;;  %v527_v25 = vpop.f32.mrf.mxu0 }
 0x15a   : > { %v746_v0 = vadd.f32 %v1841_v16, %v745_v27  ;;  %v832_v27 = vadd.f32 %v1841_v16, %v1902_v34 }
 0x15c   : > { %1057 = vrot.lane.b32.xlu2 %v746_v0, %s1549_s24  ;;  %1150 = vrot.lane.b32.xlu1 %v1001_v26, %s1549_s24  ;;  %v523_v26 = vadd.f32 %v1841_v16, %v522_v61 }
 0x15f   : > { %v844_v24 = vpop.f32.mrf.mxu2 }
 0x160   : > { %v1003_v30 = vpop.f32.mrf.mxu3 }
 0x161   : > { %v1004_v31 = vadd.f32 %v1841_v16, %v1003_v30  ;;  %v748_v32 = vpop.f32.mrf.mxu1 }
 0x162   : > { %v749_v33 = vadd.f32 %v1841_v16, %v748_v32  ;;  %v518_v32 = vadd.f32 %v1841_v16, %v1919_v46 }
 0x164   : > { %1152 = vrot.lane.b32.xlu2 %v1004_v31, %s1549_s24  ;;  %1059 = vrot.lane.b32.xlu0 %v749_v33, %s1549_s24  ;;  %v529_v33 = vpop.f32.mrf.mxu0 }
 0x165   : > { %v530_v46 = vadd.f32 %v1841_v16, %v529_v33 }
 0x167   : > { %v846_v31 = vpop.f32.mrf.mxu2 }
 0x168   : > { %v1005_v35 = vpop.f32.mrf.mxu3  ;;  %v847_v10 = vadd.f32 %v1841_v16, %v846_v31 }
 0x169   : > { %v1006_v36 = vadd.f32 %v1841_v16, %v1005_v35  ;;  %v750_v37 = vpop.f32.mrf.mxu1 }
 0x16a   : > { %v751_v38 = vadd.f32 %v1841_v16, %v750_v37 }
 0x16c   : > { %1061 = vrot.lane.b32.xlu1 %v751_v38, %s1549_s24  ;;  %1154 = vrot.lane.b32.xlu0 %v1006_v36, %s1549_s24  ;;  %v520_v38 = vadd.f32 %v1841_v16, %v1928_v52 }
 0x16e   : > { %v1040_v39 = vpop.permute.xlu2 %1039 }
 0x16f   : > { %v1088_v40 = vsel %vm1087_vm7, %v508_v5, %v1040_v39  ;;  %v837_v5 = vadd.f32 %v1841_v16, %v1926_v51  ;;  %v849_v39 = vpop.f32.mrf.mxu2 }
 0x170   : > { %1104 = vst.msk [vmem:[%s1913_s10] sm:$0xff] %vm469_vm2, %v1088_v40  ;;  %v1008_v42 = vpop.f32.mrf.mxu3  ;;  %v532_v40 = vpop.f32.mrf.mxu0 }
 0x171   : > { %v1009_v43 = vadd.f32 %v1841_v16, %v1008_v42  ;;  %v753_v44 = vpop.f32.mrf.mxu1 }
 0x172   : > { %v754_v47 = vadd.f32 %v1841_v16, %v753_v44 }
 0x174   : > { %1063 = vrot.lane.b32.xlu2 %v754_v47, %s1549_s24  ;;  %1156 = vrot.lane.b32.xlu1 %v1009_v43, %s1549_s24  ;;  %v840_v47 = vadd.f32 %v1841_v16, %v1937_v60 }
 0x178   : > { %v1010_v48 = vpop.f32.mrf.mxu3  ;;  %v534_v52 = vpop.f32.mrf.mxu0 }
 0x179   : > { %v1011_v45 = vadd.f32 %v1841_v16, %v1010_v48  ;;  %v755_v49 = vpop.f32.mrf.mxu1 }
 0x17a   : > { %v756_v50 = vadd.f32 %v1841_v16, %v755_v49  ;;  %v851_v49 = vpop.f32.mrf.mxu2 }
 0x17c   : > { %1158 = vrot.lane.b32.xlu2 %v1011_v45, %s1549_s24  ;;  %1065 = vrot.lane.b32.xlu0 %v756_v50, %s1549_s24 }
 0x180   : > { %v1013_v53 = vpop.f32.mrf.mxu3 }
 0x181   : > { %v1014_v54 = vadd.f32 %v1841_v16, %v1013_v53  ;;  %v758_v56 = vpop.f32.mrf.mxu1  ;;  %v525_v53 = vadd.f32 %v1841_v16, %v524_v12 }
 0x182   : > { %v759_v57 = vadd.f32 %v1841_v16, %v758_v56  ;;  %v854_v61 = vpop.f32.mrf.mxu2 }
 0x184   : > { %1067 = vrot.lane.b32.xlu1 %v759_v57, %s1549_s24  ;;  %1160 = vrot.lane.b32.xlu0 %v1014_v54, %s1549_s24  ;;  %v850_v54 = vadd.f32 %v1841_v16, %v849_v39 }
 0x186   : > { %v1046_v62 = vpop.permute.xlu2 %1045 }
 0x187   : > { %v1091_v63 = vsel %vm1087_vm7, %v515_v58, %v1046_v62  ;;  %v537_v62 = vpop.f32.mrf.mxu0 }
 0x188   : > { %1107 = vst.msk [vmem:[%s1913_s10 + $0x28] sm:$0xff] %vm469_vm2, %v1091_v63  ;;  %v1015_v55 = vpop.f32.mrf.mxu3  ;;  %v528_v63 = vadd.f32 %v1841_v16, %v527_v25 }
 0x189   : > { %v1016_v1 = vadd.f32 %v1841_v16, %v1015_v55  ;;  %v760_v3 = vpop.f32.mrf.mxu1  ;;  %v845_v55 = vadd.f32 %v1841_v16, %v844_v24  ;;  %v535_v24 = vadd.f32 %v1841_v16, %v534_v52 }
 0x18a   : > { %v761_v4 = vadd.f32 %v1841_v16, %v760_v3 }
 0x18c   : > { %1069 = vrot.lane.b32.xlu2 %v761_v4, %s1549_s24  ;;  %1162 = vrot.lane.b32.xlu1 %v1016_v1, %s1549_s24 }
 0x18e   : > { %v1141_v8 = vpop.permute.xlu2 %1140  ;;  %v1042_v9 = vpop.permute.xlu0 %1041 }
 0x18f   : > { %v1186_v11 = vsel %vm1087_vm7, %v835_v7, %v1141_v8  ;;  %v1089_v59 = vsel %vm1087_vm7, %v510_v6, %v1042_v9  ;;  %v856_v7 = vpop.f32.mrf.mxu2  ;;  %v538_v8 = vadd.f32 %v1841_v16, %v537_v62  ;;  %v539_v9 = vpop.f32.mrf.mxu0 }
 0x190   : > { %1426 = vst.msk [vmem:[%s1913_s10 + $0x30] sm:$0xff] %vm469_vm2, %v1186_v11  ;;  %v1018_v13 = vpop.f32.mrf.mxu3 }
 0x191   : > { %1105 = vst.msk [vmem:[%s1913_s10 + $0x8] sm:$0xff] %vm469_vm2, %v1089_v59  ;;  %v1019_v14 = vadd.f32 %v1841_v16, %v1018_v13 }
 0x194   : > { %1164 = vrot.lane.b32.xlu2 %v1019_v14, %s1549_s24  ;;  %v533_v14 = vadd.f32 %v1841_v16, %v532_v40 }
 0x196   : > { %v1044_v18 = vpop.permute.xlu1 %1043  ;;  %v1137_v19 = vpop.permute.xlu0 %1136 }
 0x197   : > { %v1090_v21 = vsel %vm1087_vm7, %v513_v15, %v1044_v18  ;;  %v1184_v22 = vsel %vm1087_vm7, %v830_v17, %v1137_v19  ;;  %v857_v15 = vadd.f32 %v1841_v16, %v856_v7  ;;  %v859_v17 = vpop.f32.mrf.mxu2  ;;  %v542_v18 = vpop.f32.mrf.mxu0 }
 0x198   : > { %1106 = vst.msk [vmem:[%s1913_s10 + $0x20] sm:$0xff] %vm469_vm2, %v1090_v21  ;;  %v1020_v23 = vpop.f32.mrf.mxu3 }
 0x199   : > { %1424 = vst.msk [vmem:[%s1913_s10 + $0x10] sm:$0xff] %vm469_vm2, %v1184_v22  ;;  %v1021_v20 = vadd.f32 %v1841_v16, %v1020_v23 }
 0x19b   : > { %1166 = vrot.lane.b32.xlu0 %v1021_v20, %s1549_s24  ;;  %v852_v20 = vadd.f32 %v1841_v16, %v851_v49 }
 0x19e   : > { %v1139_v0 = vpop.permute.xlu1 %1138  ;;  %v1052_v28 = vpop.permute.xlu2 %1051 }
 0x19f   : > { %v1185_v29 = vsel %vm1087_vm7, %v832_v27, %v1139_v0  ;;  %v1094_v30 = vsel %vm1087_vm7, %v523_v26, %v1052_v28  ;;  %v861_v25 = vpop.f32.mrf.mxu2 }
 0x1a0   : > { %1425 = vst.msk [vmem:[%s1913_s10 + $0x18] sm:$0xff] %vm469_vm2, %v1185_v29  ;;  %v544_v29 = vpop.f32.mrf.mxu0 }
 0x1a1   : > { %1110 = vst.msk [vmem:[%s1913_s10 + $0x60] sm:$0xff] %vm469_vm2, %v1094_v30  ;;  %v855_v30 = vadd.f32 %v1841_v16, %v854_v61  ;;  %v545_v31 = vadd.f32 %v1841_v16, %v544_v29 }
 0x1a6   : > { %v1147_v34 = vpop.permute.xlu2 %1146  ;;  %v1048_v35 = vpop.permute.xlu0 %1047 }
 0x1a7   : > { %v1189_v36 = vsel %vm1087_vm7, %v842_v2, %v1147_v34  ;;  %v1092_v37 = vsel %vm1087_vm7, %v518_v32, %v1048_v35  ;;  %v864_v35 = vpop.f32.mrf.mxu2 }
 0x1a8   : > { %1429 = vst.msk [vmem:[%s1913_s10 + $0x58] sm:$0xff] %vm469_vm2, %v1189_v36  ;;  %v540_v36 = vadd.f32 %v1841_v16, %v539_v9 }
 0x1a9   : > { %1108 = vst.msk [vmem:[%s1913_s10 + $0x40] sm:$0xff] %vm469_vm2, %v1092_v37  ;;  %v865_v37 = vadd.f32 %v1841_v16, %v864_v35 }
 0x1ae   : > { %v1050_v41 = vpop.permute.xlu1 %1049  ;;  %v1143_v42 = vpop.permute.xlu0 %1142 }
 0x1af   : > { %v1093_v43 = vsel %vm1087_vm7, %v520_v38, %v1050_v41  ;;  %v1187_v44 = vsel %vm1087_vm7, %v837_v5, %v1143_v42  ;;  %v543_v41 = vadd.f32 %v1841_v16, %v542_v18  ;;  %v860_v42 = vadd.f32 %v1841_v16, %v859_v17 }
 0x1b0   : > { %1109 = vst.msk [vmem:[%s1913_s10 + $0x48] sm:$0xff] %vm469_vm2, %v1093_v43 }
 0x1b1   : > { %1427 = vst.msk [vmem:[%s1913_s10 + $0x38] sm:$0xff] %vm469_vm2, %v1187_v44 }
 0x1b6   : > { %v1058_v48 = vpop.permute.xlu2 %1057  ;;  %v1145_v45 = vpop.permute.xlu1 %1144 }
 0x1b7   : > { %v1097_v50 = vsel %vm1087_vm7, %v530_v46, %v1058_v48  ;;  %v1188_v51 = vsel %vm1087_vm7, %v840_v47, %v1145_v45  ;;  %v862_v48 = vadd.f32 %v1841_v16, %v861_v25 }
 0x1b8   : > { %1113 = vst.msk [vmem:[%s1913_s10 + $0x88] sm:$0xff] %vm469_vm2, %v1097_v50  ;;  %v866_v50 = vpop.f32.mrf.mxu2 }
 0x1b9   : > { %1428 = vst.msk [vmem:[%s1913_s10 + $0x50] sm:$0xff] %vm469_vm2, %v1188_v51  ;;  %v867_v51 = vadd.f32 %v1841_v16, %v866_v50 }
 0x1be   : > { %v1153_v56 = vpop.permute.xlu2 %1152  ;;  %v1054_v57 = vpop.permute.xlu0 %1053 }
 0x1bf   : > { %v1192_v58 = vsel %vm1087_vm7, %v850_v54, %v1153_v56  ;;  %v1095_v60 = vsel %vm1087_vm7, %v525_v53, %v1054_v57 }
 0x1c0   : > { %1432 = vst.msk [vmem:[%s1913_s10 + $0x90] sm:$0xff] %vm469_vm2, %v1192_v58 }
 0x1c1   : > { %1111 = vst.msk [vmem:[%s1913_s10 + $0x68] sm:$0xff] %vm469_vm2, %v1095_v60 }
 0x1c6   : > { %v1056_v1 = vpop.permute.xlu1 %1055  ;;  %v1149_v3 = vpop.permute.xlu0 %1148 }
 0x1c7   : > { %v1096_v4 = vsel %vm1087_vm7, %v528_v63, %v1056_v1  ;;  %v1190_v6 = vsel %vm1087_vm7, %v845_v55, %v1149_v3 }
 0x1c8   : > { %1112 = vst.msk [vmem:[%s1913_s10 + $0x80] sm:$0xff] %vm469_vm2, %v1096_v4 }
 0x1c9   : > { %1430 = vst.msk [vmem:[%s1913_s10 + $0x70] sm:$0xff] %vm469_vm2, %v1190_v6 }
 0x1ce   : > { %v1151_v11 = vpop.permute.xlu1 %1150  ;;  %v1064_v59 = vpop.permute.xlu2 %1063 }
 0x1cf   : > { %v1191_v12 = vsel %vm1087_vm7, %v847_v10, %v1151_v11  ;;  %v1100_v13 = vsel %vm1087_vm7, %v538_v8, %v1064_v59 }
 0x1d0   : > { %1431 = vst.msk [vmem:[%s1913_s10 + $0x78] sm:$0xff] %vm469_vm2, %v1191_v12 }
 0x1d1   : > { %1116 = vst.msk [vmem:[%s1913_s10 + $0xc0] sm:$0xff] %vm469_vm2, %v1100_v13 }
 0x1d6   : > { %v1159_v19 = vpop.permute.xlu2 %1158  ;;  %v1060_v21 = vpop.permute.xlu0 %1059 }
 0x1d7   : > { %v1195_v22 = vsel %vm1087_vm7, %v857_v15, %v1159_v19  ;;  %v1098_v23 = vsel %vm1087_vm7, %v533_v14, %v1060_v21 }
 0x1d8   : > { %1435 = vst.msk [vmem:[%s1913_s10 + $0xb8] sm:$0xff] %vm469_vm2, %v1195_v22 }
 0x1d9   : > { %1114 = vst.msk [vmem:[%s1913_s10 + $0xa0] sm:$0xff] %vm469_vm2, %v1098_v23 }
 0x1de   : > { %v1062_v26 = vpop.permute.xlu1 %1061  ;;  %v1155_v27 = vpop.permute.xlu0 %1154 }
 0x1df   : > { %v1099_v0 = vsel %vm1087_vm7, %v535_v24, %v1062_v26  ;;  %v1193_v28 = vsel %vm1087_vm7, %v852_v20, %v1155_v27 }
 0x1e0   : > { %1115 = vst.msk [vmem:[%s1913_s10 + $0xa8] sm:$0xff] %vm469_vm2, %v1099_v0 }
 0x1e1   : > { %1433 = vst.msk [vmem:[%s1913_s10 + $0x98] sm:$0xff] %vm469_vm2, %v1193_v28 }
 0x1e6   : > { %v1070_v32 = vpop.permute.xlu2 %1069  ;;  %v1157_v33 = vpop.permute.xlu1 %1156 }
 0x1e7   : > { %v1103_v2 = vsel %vm1087_vm7, %v545_v31, %v1070_v32  ;;  %v1194_v34 = vsel %vm1087_vm7, %v855_v30, %v1157_v33 }
 0x1e8   : > { %1119 = vst.msk [vmem:[%s1913_s10 + $0xe8] sm:$0xff] %vm469_vm2, %v1103_v2 }
 0x1e9   : > { %1434 = vst.msk [vmem:[%s1913_s10 + $0xb0] sm:$0xff] %vm469_vm2, %v1194_v34 }
 0x1ee   : > { %v1165_v38 = vpop.permute.xlu2 %1164  ;;  %v1066_v5 = vpop.permute.xlu0 %1065 }
 0x1ef   : > { %v1198_v39 = vsel %vm1087_vm7, %v865_v37, %v1165_v38  ;;  %v1101_v40 = vsel %vm1087_vm7, %v540_v36, %v1066_v5 }
 0x1f0   : > { %1438 = vst.msk [vmem:[%s1913_s10 + $0xf0] sm:$0xff] %vm469_vm2, %v1198_v39 }
 0x1f1   : > { %1117 = vst.msk [vmem:[%s1913_s10 + $0xc8] sm:$0xff] %vm469_vm2, %v1101_v40 }
 0x1f6   : > { %v1068_v43 = vpop.permute.xlu1 %1067  ;;  %v1161_v44 = vpop.permute.xlu0 %1160 }
 0x1f7   : > { %v1102_v46 = vsel %vm1087_vm7, %v543_v41, %v1068_v43  ;;  %v1196_v47 = vsel %vm1087_vm7, %v860_v42, %v1161_v44 }
 0x1f8   : > { %1118 = vst.msk [vmem:[%s1913_s10 + $0xe0] sm:$0xff] %vm469_vm2, %v1102_v46 }
 0x1f9   : > { %1436 = vst.msk [vmem:[%s1913_s10 + $0xd0] sm:$0xff] %vm469_vm2, %v1196_v47 }
 0x1fe   : > { %v1163_v45 = vpop.permute.xlu1 %1162 }
 0x1ff   : > { %v1197_v49 = vsel %vm1087_vm7, %v862_v48, %v1163_v45 }
 0x200   : > { %1437 = vst.msk [vmem:[%s1913_s10 + $0xd8] sm:$0xff] %vm469_vm2, %v1197_v49 }
 0x20d   : > { %v1167_v52 = vpop.permute.xlu0 %1166 }
 0x20e   : > { %v1199_v53 = vsel %vm1087_vm7, %v867_v51, %v1167_v52 }
 0x20f   : > { %1439 = vst.msk [vmem:[%s1913_s10 + $0xf8] sm:$0xff] %vm469_vm2, %v1199_v53 }
 0x210 PF: > { %s17_s28 = sadd.s32 1, %s1544_s28   ;;  %s2100_s24 = smov %s1536_s26 }
 0x211   : > { %p14_p9 = scmp.ge.s32.totalorder %s17_s28, 6   ;;  %s2101_s25 = smov %s1540_s27 }
 0x212   : > { %s2102_s26 = smov %s2105_s29  ;;  %s2103_s27 = smov %s2109_s30 }
 0x213   :  { %16 = sbr.rel (!%p14_p9) target bundleno = 3 (0x3), region = 82 }

</bundles_post_ra>
